<compile_context>
chip_gen: v5e
topology: v5e:2x2
jax: 0.10.0
libtpu: 0.0.40
codegen_flags: <defaults>
</compile_context>

<pallas_src>
import functools

import jax
import jax.numpy as jnp
from jax import lax
from jax.experimental import pallas as pl
from jax.experimental.pallas import tpu as pltpu

LANE = 128
_SUBLANE_BY_ITEMSIZE = {4: 8, 2: 16, 1: 32}
_TARGET_BLOCK_BYTES = 2 * 1024 * 1024     # ~2 MiB per input block
_MAX_BLOCK_BYTES = 4 * 1024 * 1024        # above this per minimal block -> pad fallback
_VMEM_LIMIT_BYTES = 32 * 1024 * 1024      # explicit (v5e default is only 16 MiB)
_MIN_PASS_SLICES = 4                      # parallel slices for the min pass (megacore)


def _cdiv(a, b):
    return -(-a // b)


def _round_up(a, b):
    return _cdiv(a, b) * b


def _flatten_2d(shape, itemsize):
    """Free (bitcast) 2-D view (R, C) of a contiguous tensor + pad-fallback flag."""
    n = 1
    for d in shape:
        n *= d
    if n % LANE == 0:
        return n // LANE, LANE, False
    # Ragged n: merge trailing dims (a free row-major reshape) until the row is
    # at least one lane wide; the block then uses the full row extent, which is
    # legal regardless of 128-divisibility and keeps HBM traffic at the minimum.
    c = 1
    for d in reversed(shape):
        c *= d
        if c >= LANE:
            break
    sub = _SUBLANE_BY_ITEMSIZE.get(itemsize, 8)
    if c * itemsize * sub > _MAX_BLOCK_BYTES:
        # TODO(synk): pathological ragged row (huge trailing dim with n % 128 != 0);
        # fall back to a padded (rows, 128) layout (costs one pad + one slice copy).
        return _cdiv(n, LANE), LANE, True
    return n // c, c, False


def _choose_block_rows(rows, cols, itemsize):
    """Row-block size: ~2 MiB blocks, but keep >= ~4 blocks for megacore sharding."""
    sub = _SUBLANE_BY_ITEMSIZE.get(itemsize, 8)
    cap = max(sub, (_TARGET_BLOCK_BYTES // (cols * itemsize)) // sub * sub)
    per4 = _round_up(_cdiv(rows, 4), sub)
    br = min(cap, per4)
    if br >= rows:
        return rows           # single full-extent block (legal even if rows % sub != 0)
    return br


# ---------------------------------------------------------------------------
# Kernel 1: partial global-min reduction (only for rel_shift=True).  Each
# parallel slice p reduces its row blocks straight to a scalar per block and
# folds them into its own (8,128) output block; the wrapper jnp.min's them.
# ---------------------------------------------------------------------------
def _partial_min_kernel(x_ref, pmin_ref, *, block_rows, total_rows,
                        inner_blocks, has_tail):
    j = pl.program_id(1)

    @pl.when(j == 0)
    def _():
        pmin_ref[...] = jnp.full(pmin_ref.shape, jnp.inf, dtype=pmin_ref.dtype)

    x = x_ref[...].astype(jnp.float32)

    if not has_tail:
        # Every block fully in-bounds: no masking anywhere (statically elided).
        pmin_ref[...] = jnp.minimum(pmin_ref[...], jnp.min(x))
    else:
        blk = pl.program_id(0) * inner_blocks + j
        needs_mask = (blk + 1) * block_rows > total_rows

        @pl.when(jnp.logical_not(needs_mask))
        def _():
            pmin_ref[...] = jnp.minimum(pmin_ref[...], jnp.min(x))

        @pl.when(needs_mask)
        def _():
            # Boundary (or duplicated overflow) block: mask OOB rows with +inf.
            row = lax.broadcasted_iota(jnp.int32, x.shape, 0) + blk * block_rows
            xm = jnp.where(row < total_rows, x, jnp.inf)
            pmin_ref[...] = jnp.minimum(pmin_ref[...], jnp.min(xm))


def _global_min(x2d, block_rows):
    rows, cols = x2d.shape
    nblk = _cdiv(rows, block_rows)
    num_slices = max(1, min(_MIN_PASS_SLICES, nblk))
    inner = _cdiv(nblk, num_slices)
    exact = (num_slices * inner == nblk)
    has_tail = (rows % block_rows != 0) or (not exact)

    if exact:
        in_map = lambda p, j: (p * inner + j, 0)
    else:
        # Clamp overflow iterations onto the last real block (their contribution
        # is masked to +inf in-kernel, so the duplicate read is harmless).
        in_map = lambda p, j: (jnp.minimum(p * inner + j, nblk - 1), 0)

    pmin = pl.pallas_call(
        functools.partial(_partial_min_kernel, block_rows=block_rows,
                          total_rows=rows, inner_blocks=inner, has_tail=has_tail),
        out_shape=jax.ShapeDtypeStruct((8 * num_slices, LANE), jnp.float32),
        grid=(num_slices, inner),
        in_specs=[pl.BlockSpec((block_rows, cols), in_map)],
        out_specs=pl.BlockSpec((8, LANE), lambda p, j: (p, 0)),
        compiler_params=pltpu.CompilerParams(
            dimension_semantics=("parallel", "arbitrary"),
            vmem_limit_bytes=_VMEM_LIMIT_BYTES),
    )(x2d)
    return jnp.min(pmin)


# ---------------------------------------------------------------------------
# Kernel 2a: elementwise fake-quant with compile-time constants (rel_shift=False).
# ---------------------------------------------------------------------------
def _quant_kernel_const(x_ref, o_ref, *, low, high, scale, inv_scale):
    x = x_ref[...].astype(jnp.float32)
    act = jnp.minimum(jnp.maximum(x, low), high)
    o_ref[...] = (jnp.round(act * scale) * inv_scale).astype(o_ref.dtype)


# ---------------------------------------------------------------------------
# Kernel 2b: elementwise fake-quant with runtime scalars (rel_shift=True path;
# the clamp / qmax branch depends on the global min).  Scalars via SMEM prefetch.
# ---------------------------------------------------------------------------
def _quant_kernel_dyn(scal_ref, x_ref, o_ref):
    low = scal_ref[0]        # 0 or -alpha
    high = scal_ref[1]       # alpha
    scale = scal_ref[2]      # q / alpha
    inv_scale = scal_ref[3]  # alpha / q
    x = x_ref[...].astype(jnp.float32)
    act = jnp.minimum(jnp.maximum(x, low), high)
    o_ref[...] = (jnp.round(act * scale) * inv_scale).astype(o_ref.dtype)


# ---------------------------------------------------------------------------
# Wrapper module (inference-mode forward of quant_act_pams).
# ---------------------------------------------------------------------------
class QuantActPAMS:
    def __init__(self, k_bits, ema_epoch=1, decay=0.9997, is_teacher=False,
                 rel_shift=False):
        self.k_bits = k_bits
        self.qmax = 2.0 ** (k_bits - 1) - 1.0
        self.qmax_shift = 2.0 ** k_bits - 1.0
        self.rel_shift = rel_shift
        self.ema_epoch = ema_epoch
        self.decay = decay
        self.is_teacher = is_teacher
        # nn.Parameter alpha, deterministically initialized to 10 (reset_parameter).
        self.alpha = 10.0
        # TODO(synk): training-time EMA branch (epoch <= ema_epoch) that updates the
        # max_val buffer / alpha parameter is stateful and not implemented here.

    @functools.partial(jax.jit, static_argnums=0)
    def __call__(self, x):
        orig_shape = x.shape
        orig_dtype = x.dtype
        n = x.size
        itemsize = jnp.dtype(orig_dtype).itemsize

        rows, cols, needs_pad = _flatten_2d(orig_shape, itemsize)
        if needs_pad:
            flat = jnp.pad(jnp.reshape(x, (n,)), (0, rows * cols - n))
            x2d = jnp.reshape(flat, (rows, cols))
        else:
            x2d = jnp.reshape(x, (rows, cols))   # free row-major reshape, no copy

        br = _choose_block_rows(rows, cols, itemsize)
        nblk = _cdiv(rows, br)
        cparams = pltpu.CompilerParams(
            dimension_semantics=("parallel",),
            vmem_limit_bytes=_VMEM_LIMIT_BYTES)

        alpha = float(self.alpha)
        if self.rel_shift:
            # Branch depends on the sign of the global min -> one reduction pass.
            x_min = _global_min(x2d, br)
            use_shift = x_min >= 0.0
            a = jnp.float32(alpha)
            low = jnp.where(use_shift, jnp.float32(0.0), -a)
            q = jnp.where(use_shift, jnp.float32(self.qmax_shift),
                          jnp.float32(self.qmax))
            scalars = jnp.stack([low, a, q / a, a / q]).astype(jnp.float32)

            out2d = pl.pallas_call(
                _quant_kernel_dyn,
                out_shape=jax.ShapeDtypeStruct((rows, cols), orig_dtype),
                grid_spec=pltpu.PrefetchScalarGridSpec(
                    num_scalar_prefetch=1,
                    grid=(nblk,),
                    in_specs=[pl.BlockSpec((br, cols), lambda i, s: (i, 0))],
                    out_specs=pl.BlockSpec((br, cols), lambda i, s: (i, 0))),
                compiler_params=cparams,
            )(scalars, x2d)
        else:
            # rel_shift statically False: the min can never flip the branch, so the
            # reduction pass is dead and all four constants are compile-time.
            q = self.qmax
            out2d = pl.pallas_call(
                functools.partial(_quant_kernel_const, low=-alpha, high=alpha,
                                  scale=q / alpha, inv_scale=alpha / q),
                out_shape=jax.ShapeDtypeStruct((rows, cols), orig_dtype),
                grid=(nblk,),
                in_specs=[pl.BlockSpec((br, cols), lambda i: (i, 0))],
                out_specs=pl.BlockSpec((br, cols), lambda i: (i, 0)),
                compiler_params=cparams,
            )(x2d)

        if needs_pad:
            out = jnp.reshape(out2d, (rows * cols,))[:n]
            return jnp.reshape(out, orig_shape)
        return jnp.reshape(out2d, orig_shape)


# ---------------------------------------------------------------------------
# Pure-JAX reference (same fused-scale operation order as the kernels;
# mathematically identical to round(act/alpha*q)/q*alpha).
# ---------------------------------------------------------------------------
def _reference(x, alpha, k_bits, rel_shift):
    alpha = jnp.float32(alpha)
    qmax = jnp.float32(2.0 ** (k_bits - 1) - 1.0)
    qmax_shift = jnp.float32(2.0 ** k_bits - 1.0)
    use_shift = jnp.logical_and(jnp.min(x) >= 0, rel_shift)
    low = jnp.where(use_shift, jnp.float32(0.0), -alpha)
    q = jnp.where(use_shift, qmax_shift, qmax)
    act = jnp.minimum(jnp.maximum(x.astype(jnp.float32), low), alpha)
    return (jnp.round(act * (q / alpha)) * (alpha / q)).astype(x.dtype)


if __name__ == "__main__":
    key = jax.random.PRNGKey(0)
    k0, k1, k2 = jax.random.split(key, 3)

    # NCHW activation, default branch (rel_shift=False -> baked-constant kernel,
    # no min pass launched).
    mod = QuantActPAMS(k_bits=4, rel_shift=False)
    x = jax.random.normal(k0, (2, 4, 16, 16), dtype=jnp.float32) * 5.0
    y = jax.block_until_ready(mod(x))
    assert y.shape == x.shape and y.dtype == x.dtype
    assert jnp.allclose(y, _reference(x, 10.0, 4, False), atol=1e-5), \
        "mismatch vs reference (rel_shift=False)"

    # Non-negative input + rel_shift=True: exercises the Pallas min pass and the
    # 2^k - 1 quantizer branch (dynamic-scalar quant kernel).
    mod_rs = QuantActPAMS(k_bits=4, rel_shift=True)
    x_pos = jnp.abs(x)
    y_pos = jax.block_until_ready(mod_rs(x_pos))
    assert jnp.allclose(y_pos, _reference(x_pos, 10.0, 4, True), atol=1e-5), \
        "mismatch vs reference (rel_shift=True, non-negative)"

    # Ragged shape (n % 128 != 0): flattened to (12, 111*111) with no pad/slice
    # copies; multi-block grid with a partial last row block in both kernels
    # (exercises the gated tail masking of the min reduction and masked writes
    # of the quant pass); negative values so the standard branch wins.
    x_big = jax.random.normal(k1, (3, 4, 111, 111), dtype=jnp.float32) * 5.0
    y_big = jax.block_until_ready(mod_rs(x_big))
    assert jnp.allclose(y_big, _reference(x_big, 10.0, 4, True), atol=1e-5), \
        "mismatch vs reference (ragged multi-block)"

    # Lane-aligned medium shape: >= 4 row blocks on the 'parallel' grid
    # (megacore-shardable path) with the baked-constant kernel.
    x_med = jax.random.normal(k2, (2, 8, 32, 32), dtype=jnp.float32) * 5.0
    y_med = jax.block_until_ready(mod(x_med))
    assert jnp.allclose(y_med, _reference(x_med, 10.0, 4, False), atol=1e-5), \
        "mismatch vs reference (multi-block lane-aligned)"

    print("KERNEL_OK")
</pallas_src>

<mosaic_0001>
module attributes {stable_mosaic.version = 11 : i64} {
  func.func @_quant_kernel_const(%arg0: i32, %arg1: memref<8x128xf32, #tpu.memory_space<vmem>>, %arg2: memref<8x128xf32, #tpu.memory_space<vmem>>) attributes {dimension_semantics = [#tpu.dimension_semantics<parallel>], iteration_bounds = array<i64: 2>, scalar_prefetch = 0 : i64, scratch_operands = 0 : i64, tpu.core_type = #tpu.core_type<tc>, window_params = [{transform_indices = @transform_0, window_bounds = array<i64: 8, 128>}, {transform_indices = @transform_1, window_bounds = array<i64: 8, 128>}]} {
    %c0 = arith.constant 0 : index
    %c0_0 = arith.constant 0 : index
    %0 = vector.load %arg1[%c0, %c0_0] : memref<8x128xf32, #tpu.memory_space<vmem>>, vector<8x128xf32>
    %cst = arith.constant -1.000000e+01 : f32
    %1 = vector.broadcast %cst : f32 to vector<8x128xf32>
    %2 = arith.maximumf %0, %1 : vector<8x128xf32>
    %cst_1 = arith.constant 1.000000e+01 : f32
    %3 = vector.broadcast %cst_1 : f32 to vector<8x128xf32>
    %4 = arith.minimumf %2, %3 : vector<8x128xf32>
    %cst_2 = arith.constant 0.699999988 : f32
    %5 = vector.broadcast %cst_2 : f32 to vector<8x128xf32>
    %6 = arith.mulf %4, %5 : vector<8x128xf32>
    %7 = math.roundeven %6 : vector<8x128xf32>
    %cst_3 = arith.constant 1.42857146 : f32
    %8 = vector.broadcast %cst_3 : f32 to vector<8x128xf32>
    %9 = arith.mulf %7, %8 : vector<8x128xf32>
    %c0_4 = arith.constant 0 : index
    %c0_5 = arith.constant 0 : index
    %10 = vector.load %arg2[%c0_4, %c0_5] : memref<8x128xf32, #tpu.memory_space<vmem>>, vector<8x128xf32>
    tpu.vector_store %arg2[%c0_4, %c0_5], %9 {strides = array<i32>} : memref<8x128xf32, #tpu.memory_space<vmem>>, vector<8x128xf32>,
    return
  }
  func.func @transform_0(%arg0: i32) -> (i32, i32) {
    %c0_i32 = arith.constant 0 : i32
    %c0_i32_0 = arith.constant 0 : i32
    return %arg0, %c0_i32 : i32, i32
  }
  func.func @transform_1(%arg0: i32) -> (i32, i32) {
    %c0_i32 = arith.constant 0 : i32
    %c0_i32_0 = arith.constant 0 : i32
    return %arg0, %c0_i32 : i32, i32
  }
}

</mosaic_0001>

<bundles_post_ra>
// kernel: a_call__.1
= control target key start
LH: loop header
LB: loop body
LE: loop exit
PB: predicated region body
PF: predicated region fallthrough
CT: control target
= control target key end

     0   :  { %s216_s6 = smov 0   ;;  %s227_s0 = inlined_call_operand.vmem [shape: f32[16,128], index: 0, kind: input, shape index: {}]   ;;  %s228_s1 = inlined_call_operand.vmem [shape: f32[16,128], index: 1, kind: output, shape index: {}]  }
   0x1 LB: > { %s172_s7 = sadd.s32 4294967295, %s204_s6   ;;  %p176_p0 = scmp.ge.s32.totalorder %s204_s6, 1  ;;  %s204_s6 = sphi %s216_s6, %s11_s6  }
   0x2   : > { %p86_p1 = scmp.lt.s32.totalorder %s204_s6, 3 }
   0x4   : > { %p87_p2 = pnand %p176_p0, %p86_p1 }
   0x5   : > { %p104_p3 = scmp.lt.s32.totalorder (!%p87_p2), %s172_s7, 1 }
   0x6   : > { %90 = sbr.rel (%p87_p2) target bundleno = 31 (0x1f), region = 24 }
   0xb   : > { %s230_s7 = smov (!%p104_p3, %s172_s7), 1 }
   0xc   : > { %s177_s8 = sshll.u32 %s230_s7, 3 }
   0xd   : > { %s107_s11 = scalar_lea.vmem %s227_s0, %s177_s8  ;;  %s111_s14 = scalar_lea.vmem %s228_s1, %s177_s8 }
   0xe   : > { %v112_v0 = vld [vmem:[%s107_s11] sm:$0xff] }
   0xf   : > { %v179_v1 = vclamps-f32 %v112_v0, 10.0 }
  0x11   : > { %v115_v2 = vmul.f32 0.7, %v179_v1 }
  0x13   : > { %v184_v3 = vcvt.f32.s32 %v115_v2  ;;  %v182_v4 = vand.u32 2147483647, %v115_v2  ;;  %v187_v6 = vand.u32 2147483648, %v115_v2 }
  0x15   : > { %v185_v5 = vcvt.s32.f32 %v184_v3  ;;  %vm183_vm0 = vcmp.lt.f32.partialorder %v182_v4, 8388608.0 }
  0x17   : > { %v186_v7 = vand.u32 2147483647, %v185_v5 }
  0x19   : > { %v188_v8 = vor.u32 %v187_v6, %v186_v7 }
  0x1b   : > { %v189_v9 = vsel %vm183_vm0, %v188_v8, %v115_v2 }
  0x1c   : > { %v117_v10 = vmul.f32 1.4285715, %v189_v9 }
  0x1e   : > { %118 = vst [vmem:[%s111_s14] sm:$0xff] %v117_v10 }
  0x1f PF: > { %s11_s6 = sadd.s32 1, %s204_s6  }
  0x20   : > { %p8_p4 = scmp.ge.s32.totalorder %s11_s6, 4  }
  0x22   :  { %10 = sbr.rel (!%p8_p4) target bundleno = 1 (0x1), region = 54 }

</bundles_post_ra>
